<compile_context>
chip_gen: v5e
topology: v5e:2x2
jax: 0.10.0
libtpu: 0.0.40
codegen_flags: <defaults>
</compile_context>

<pallas_src>
import jax
import jax.numpy as jnp
from jax.experimental import pallas as pl
from jax.experimental.pallas import tpu as pltpu


def attention_kernel(x_ref, w_ref, b_ref, o_ref):
    """One batch-tile per grid step.

    x_ref: (TB, S, D) VMEM  input features (streamed)
    w_ref: (1, D)     VMEM  Linear weight (resident, constant index_map)
    b_ref: (1,)       SMEM  Linear bias (scalar)
    o_ref: (TB, S)    VMEM  softmax over the sequence axis (lane-dense)
    """
    x = x_ref[...].astype(jnp.float32)          # (TB, S, D)
    w = w_ref[...].astype(jnp.float32)          # (1, D) -> broadcasts over (TB, S, D)

    # Per-position score via VPU multiply + reduce over the feature (lane) axis.
    scores = jnp.sum(x * w, axis=-1) + b_ref[0]  # (TB, S), f32

    # Numerically stable softmax over the sequence axis (now the lane axis).
    # Exact divide: the kernel is memory-bound, so full precision here is free
    # and keeps the output bit-close to the reference softmax.
    m = jnp.max(scores, axis=-1, keepdims=True)
    e = jnp.exp(scores - m)
    denom = jnp.sum(e, axis=-1, keepdims=True)
    p = e / denom
    o_ref[...] = p.astype(o_ref.dtype)


def _choose_tb(B, S, D, itemsize,
               vmem_budget_bytes=40 << 20, target_bytes=4 << 20):
    """Pick a batch tile TB (divisor of B).

    TB must be a multiple of 8 (sublane-aligned (TB, S) output block) or equal
    to B. The double-buffered (TB, S, D) input block must fit the VMEM budget;
    we grow TB toward ~target_bytes per block.
    """
    per_batch = max(1, S * D * itemsize)
    cands = sorted({tb for tb in range(8, B + 1, 8) if B % tb == 0} | {B})
    best = cands[0]
    for tb in cands:
        if 2 * tb * per_batch > vmem_budget_bytes:
            break
        best = tb
        if tb * per_batch >= target_bytes:
            break
    # Prefer >= 2 grid steps so v7x's two TensorCores both get work.
    if best == B:
        smaller = [tb for tb in cands if tb < B]
        if smaller:
            best = smaller[-1]
    return best


def attention_block(x, w, b):
    """x: (B, S, D); w: (1, D); b: (1,). Returns softmax attention of shape (B, S, 1)."""
    B, S, D = x.shape
    tb = _choose_tb(B, S, D, x.dtype.itemsize)
    grid = (B // tb,)

    out2d = pl.pallas_call(
        attention_kernel,
        out_shape=jax.ShapeDtypeStruct((B, S), x.dtype),
        grid=grid,
        in_specs=[
            pl.BlockSpec((tb, S, D), lambda i: (i, 0, 0)),            # x: streamed
            pl.BlockSpec((1, D), lambda i: (0, 0)),                   # w: VMEM-resident
            pl.BlockSpec(memory_space=pltpu.MemorySpace.SMEM),        # b: scalar in SMEM
        ],
        out_specs=pl.BlockSpec((tb, S), lambda i: (i, 0)),            # lane-dense output
        compiler_params=pltpu.CompilerParams(
            dimension_semantics=("parallel",),
            # Above v5e/v6e default scoped limits, below v7x's 64 MiB physical VMEM.
            vmem_limit_bytes=48 << 20,
        ),
    )(x, w, b)

    return out2d.reshape(B, S, 1)


if __name__ == "__main__":
    key = jax.random.PRNGKey(0)
    B, S, D = 2, 8, 32

    k_x, k_w, k_b = jax.random.split(key, 3)
    x = jax.random.normal(k_x, (B, S, D), dtype=jnp.float32)

    # Deterministic Linear(dim, 1) init, PyTorch-style uniform(-1/sqrt(D), 1/sqrt(D))
    bound = 1.0 / (D ** 0.5)
    w = jax.random.uniform(k_w, (1, D), minval=-bound, maxval=bound, dtype=jnp.float32)
    b = jax.random.uniform(k_b, (1,), minval=-bound, maxval=bound, dtype=jnp.float32)

    out = attention_block(x, w, b)
    out = jax.block_until_ready(out)

    # Reference in plain JAX.
    ref = jax.nn.softmax(jnp.einsum("bsd,od->bso", x, w) + b[None, None, :], axis=1)

    assert out.shape == (B, S, 1)
    assert jnp.allclose(out, ref, atol=1e-5, rtol=1e-5), float(jnp.max(jnp.abs(out - ref)))
    # Each batch's distribution along dim 1 sums to 1.
    assert jnp.allclose(jnp.sum(out, axis=1), 1.0, atol=1e-5)

    print("KERNEL_OK")
</pallas_src>

<mosaic_0001>
module attributes {stable_mosaic.version = 11 : i64} {
  func.func @attention_kernel(%arg0: i32, %arg1: memref<2x8x32xf32, #tpu.memory_space<vmem>>, %arg2: memref<1x32xf32, #tpu.memory_space<vmem>>, %arg3: memref<1xf32, #tpu.memory_space<smem>>, %arg4: memref<2x8xf32, #tpu.memory_space<vmem>>) attributes {dimension_semantics = [#tpu.dimension_semantics<parallel>], iteration_bounds = array<i64: 1>, scalar_prefetch = 0 : i64, scratch_operands = 0 : i64, tpu.core_type = #tpu.core_type<tc>, window_params = [{transform_indices = @transform_0, window_bounds = array<i64: 2, 8, 32>}, {pipeline_mode = #tpu.pipeline_mode<synchronous>, transform_indices = @transform_1, window_bounds = array<i64: 1, 32>}, {transform_indices = @transform_2, window_bounds = array<i64: 1>}, {transform_indices = @transform_3, window_bounds = array<i64: 2, 8>}]} {
    %c0 = arith.constant 0 : index
    %c0_0 = arith.constant 0 : index
    %c0_1 = arith.constant 0 : index
    %0 = vector.load %arg1[%c0, %c0_0, %c0_1] : memref<2x8x32xf32, #tpu.memory_space<vmem>>, vector<2x8x32xf32>
    %c0_2 = arith.constant 0 : index
    %c0_3 = arith.constant 0 : index
    %1 = vector.load %arg2[%c0_2, %c0_3] : memref<1x32xf32, #tpu.memory_space<vmem>>, vector<1x32xf32>
    %2 = vector.shape_cast %1 : vector<1x32xf32> to vector<1x1x32xf32>
    %3 = vector.broadcast %2 : vector<1x1x32xf32> to vector<2x8x32xf32>
    %4 = arith.mulf %0, %3 : vector<2x8x32xf32>
    %cst = arith.constant dense<0.000000e+00> : vector<2x8xf32>
    %5 = vector.multi_reduction <add>, %4, %cst [2] : vector<2x8x32xf32> to vector<2x8xf32>
    %c0_4 = arith.constant 0 : index
    %6 = memref.load %arg3[%c0_4] : memref<1xf32, #tpu.memory_space<smem>>
    %7 = vector.broadcast %6 : f32 to vector<2x8xf32>
    %8 = arith.addf %5, %7 : vector<2x8xf32>
    %cst_5 = arith.constant dense<0xFF800000> : vector<2xf32>
    %9 = vector.multi_reduction <maximumf>, %8, %cst_5 [1] : vector<2x8xf32> to vector<2xf32>
    %10 = vector.shape_cast %9 : vector<2xf32> to vector<2x1xf32>
    %11 = vector.broadcast %10 : vector<2x1xf32> to vector<2x8xf32>
    %12 = arith.subf %8, %11 : vector<2x8xf32>
    %13 = math.exp %12 : vector<2x8xf32>
    %cst_6 = arith.constant dense<0.000000e+00> : vector<2xf32>
    %14 = vector.multi_reduction <add>, %13, %cst_6 [1] : vector<2x8xf32> to vector<2xf32>
    %15 = vector.shape_cast %14 : vector<2xf32> to vector<2x1xf32>
    %16 = vector.broadcast %15 : vector<2x1xf32> to vector<2x8xf32>
    %17 = arith.divf %13, %16 : vector<2x8xf32>
    %c0_7 = arith.constant 0 : index
    %c0_8 = arith.constant 0 : index
    %18 = vector.load %arg4[%c0_7, %c0_8] : memref<2x8xf32, #tpu.memory_space<vmem>>, vector<2x8xf32>
    tpu.vector_store %arg4[%c0_7, %c0_8], %17 {strides = array<i32>} : memref<2x8xf32, #tpu.memory_space<vmem>>, vector<2x8xf32>,
    return
  }
  func.func @transform_0(%arg0: i32) -> (i32, i32, i32) {
    %c0_i32 = arith.constant 0 : i32
    %c0_i32_0 = arith.constant 0 : i32
    %c0_i32_1 = arith.constant 0 : i32
    return %arg0, %c0_i32, %c0_i32_0 : i32, i32, i32
  }
  func.func @transform_1(%arg0: i32) -> (i32, i32) {
    %c0_i32 = arith.constant 0 : i32
    %c0_i32_0 = arith.constant 0 : i32
    %c0_i32_1 = arith.constant 0 : i32
    return %c0_i32, %c0_i32_0 : i32, i32
  }
  func.func @transform_2(%arg0: i32) -> i32 {
    %c0_i32 = arith.constant 0 : i32
    %c0_i32_0 = arith.constant 0 : i32
    return %c0_i32 : i32
  }
  func.func @transform_3(%arg0: i32) -> (i32, i32) {
    %c0_i32 = arith.constant 0 : i32
    %c0_i32_0 = arith.constant 0 : i32
    return %arg0, %c0_i32 : i32, i32
  }
}

</mosaic_0001>

<bundles_post_ra>
// kernel: tpu_custom_call.1
= control target key start
LH: loop header
LB: loop body
LE: loop exit
PB: predicated region body
PF: predicated region fallthrough
CT: control target
= control target key end

     0   :  { %9 = vsyncpa [#allocation4], 0  ;;  %s275_s0 = inlined_call_operand.hbm [shape: f32[2,8,32], index: 0, kind: input, shape index: {}]   ;;  %s276_s1 = inlined_call_operand.vmem [shape: f32[1,32], index: 1, kind: input, shape index: {}]   ;;  %s277_s2 = inlined_call_operand.<no memory space> [shape: f32[1], index: 2, kind: input, shape index: {}]   ;;  %s278_s3 = inlined_call_operand.hbm [shape: f32[2,8], index: 3, kind: output, shape index: {}]  }
   0x1   :  { %10 = vsyncpa [#allocation5], 0  ;;  %s15_s14 = sshll.u32 %s275_s0, 4  ;;  %s224_s15 = smov [#allocation3]   ;;  %s16_s14 = int_to_ptr.hbm [resolvable:$true] %s15_s14 }
   0x2   :  { %s17_s16 = sshll.u32 %s224_s15, 4  ;;  %s225_s17 = smov 128   ;;  %s18_s16 = int_to_ptr.vmem [resolvable:$true] %s17_s16 }
   0x3   :  { %s226_s18 = smov 8  }
   0x4   :  { %23 = dma.hbm_to_vmem [thread:$0]  %s16_s14, 256, %s18_s16, [#allocation4], %s225_s17, %s225_s17, %s226_s18  }
   0x5   :  { %220 = dma.done.wait [#allocation4], 256  }
   0x6   :  { %221 = vsyncadd [#allocation4], 4294967040  ;;  %v32_v0 = vld [vmem:[#allocation3] sm:$0xff]  ;;  %vm40_vm0 = vcmask 261120   ;;  %v33_v3 = vld [vmem:[#allocation3 + $0x8] sm:$0xff]  ;;  %v53_v8 = vlaneseq  ;;  %v48_v9 = vstv %s277_s2  ;;  %vm57_vm1 = vcmask 1041409  }
   0x7   :  { %v163_v1 = vld [vmem:[%s276_s1] ss:$0 sm:$0xff]  ;;  %vm60_vm2 = vcmask 58368   ;;  %v227_v18 = vmov 0   ;;  %s228_s1 = smov [#allocation6]   ;;  %s145_s24 = sshll.u32 %s278_s3, 4  ;;  %s146_s24 = int_to_ptr.hbm [resolvable:$true] %s145_s24 }
   0x8   :  { %v38_v2 = vmul.f32 %v163_v1, %v32_v0  ;;  %v39_v5 = vmul.f32 %v163_v1, %v33_v3  ;;  %v258_v10 = vand.u32 127, %v53_v8  ;;  %161 = vset.pattern.permute.xlu2 %v227_v18  ;;  %160 = vset.pattern.permute.xlu1 %v227_v18  ;;  %s143_s2 = sshll.u32 %s228_s1, 4  ;;  %s144_s2 = int_to_ptr.vmem [resolvable:$true] %s143_s2 }
   0x9   :  { %162 = vset.pattern.permute.xlu0 %v227_v18 }
   0xa   :  { %v41_v4 = vsel %vm40_vm0, %v38_v2, 0.0  ;;  %v44_v6 = vsel %vm40_vm0, %v39_v5, 0.0 }
   0xb   :  { %42 = vadd.xlane.f32.xlu0 %v41_v4 }
  0x13   :  { %45 = vadd.xlane.f32.xlu0 %v44_v6 }
  0x7e   :  { %v43_v7 = vpop.xlane.xlu0 %42 }
  0x7f   :  { %v49_v11 = vadd.f32 %v48_v9, %v43_v7 }
  0x81   :  { %v55_v14 = vperm.slane %v49_v11, %v258_v10 }
  0x86   :  { %v46_v12 = vpop.xlane.xlu0 %45 }
  0x87   :  { %v50_v13 = vadd.f32 %v48_v9, %v46_v12 }
  0x89   :  { %v56_v15 = vperm.slane %v50_v13, %v258_v10 }
  0x8b   :  { %v58_v16 = vsel %vm57_vm1, %v56_v15, %v55_v14 }
  0x8c   :  { %v61_v17 = vsel %vm60_vm2, %v58_v16, -inf }
  0x8d   :  { %62 = vmax.xlane.f32.xlu1 %v61_v17 }
 0x100   :  { %v63_v19 = vpop.xlane.xlu1 %62 }
 0x101   :  { %v65_v20 = vperm.slane %v63_v19, 0  ;;  %v66_v21 = vperm.slane %v63_v19, 1 }
 0x103   :  { %v69_v22 = vsub.f32 %v49_v11, %v65_v20  ;;  %v70_v23 = vsub.f32 %v50_v13, %v66_v21 }
 0x105   :  { %v71_v24 = vmul.f32 1.442695, %v69_v22  ;;  %v73_v25 = vmul.f32 1.442695, %v70_v23 }
 0x107   :  { %164 = vpow2.f32 %v71_v24 }
 0x108   :  { %166 = vpow2.f32 %v73_v25 }
 0x10d   :  { %v165_v26 = vpop.eup %164 }
 0x10e   :  { %v167_v27 = vpop.eup %166  ;;  %78 = vperm.xlu1 %160, %v165_v26  }
 0x10f   :  { %81 = vperm.xlu2 %161, %v167_v27  }
 0x169   :  { %v82_v28 = vpop.permute.xlu2 %81 }
 0x16a   :  { %v84_v30 = vperm.slane %v82_v28, %v258_v10 }
 0x180   :  { %v79_v29 = vpop.permute.xlu1 %78 }
 0x181   :  { %v83_v31 = vperm.slane %v79_v29, %v258_v10 }
 0x183   :  { %v85_v32 = vsel %vm57_vm1, %v84_v30, %v83_v31 }
 0x184   :  { %v87_v33 = vsel %vm60_vm2, %v85_v32, 0.0 }
 0x185   :  { %88 = vadd.xlane.f32.xlu2 %v87_v33 }
 0x1f8   :  { %v89_v34 = vpop.xlane.xlu2 %88 }
 0x1f9   :  { %v91_v35 = vperm.slane %v89_v34, 0  ;;  %v92_v36 = vperm.slane %v89_v34, 1 }
 0x1fb   :  { %168 = vrcp.f32 %v91_v35  ;;  %v106_v43 = vand.u32 2147483648, %v91_v35  ;;  %v121_v44 = vand.u32 2147483648, %v92_v36  ;;  %v104_v46 = vand.u32 2147483647, %v91_v35 }
 0x1fc   :  { %170 = vrcp.f32 %v92_v36  ;;  %v119_v48 = vand.u32 2147483647, %v92_v36  ;;  %vm100_vm5 = vweird.f32 %v91_v35  ;;  %vm115_vm6 = vweird.f32 %v92_v36 }
 0x1fd   :  { %v107_v51 = vor.u32 1.1754944e-38, %v106_v43  ;;  %v122_v52 = vor.u32 1.1754944e-38, %v121_v44  ;;  %vm105_vm9 = vcmp.eq.f32.partialorder %v104_v46, 8.507059e+37 }
 0x1fe   :  { %vm120_vm10 = vcmp.eq.f32.partialorder %v119_v48, 8.507059e+37 }
 0x201   :  { %v169_v37 = vpop.eup %168 }
 0x202   :  { %v171_v38 = vpop.eup %170  ;;  %v96_v39 = vmul.f32 %v169_v37, %v91_v35  ;;  %vm101_vm3 = vweird.f32 %v169_v37 }
 0x203   :  { %v111_v40 = vmul.f32 %v171_v38, %v92_v36  ;;  %vm116_vm4 = vweird.f32 %v171_v38  ;;  %vm102_vm7 = vmor %vm100_vm5, %vm101_vm3 }
 0x204   :  { %v97_v41 = vsub.f32 1.0, %v96_v39  ;;  %vm117_vm8 = vmor %vm115_vm6, %vm116_vm4 }
 0x205   :  { %v112_v42 = vsub.f32 1.0, %v111_v40 }
 0x206   :  { %v98_v45 = vmul.f32 %v169_v37, %v97_v41 }
 0x207   :  { %v113_v47 = vmul.f32 %v171_v38, %v112_v42 }
 0x208   :  { %v99_v49 = vadd.f32 %v169_v37, %v98_v45 }
 0x209   :  { %v114_v50 = vadd.f32 %v171_v38, %v113_v47 }
 0x20a   :  { %v103_v53 = vsel %vm102_vm7, %v169_v37, %v99_v49 }
 0x20b   :  { %v118_v54 = vsel %vm117_vm8, %v171_v38, %v114_v50  ;;  %v108_v55 = vsel %vm105_vm9, %v107_v51, %v103_v53 }
 0x20c   :  { %v123_v56 = vsel %vm120_vm10, %v122_v52, %v118_v54  ;;  %v109_v57 = vmul.f32 %v165_v26, %v108_v55 }
 0x20d   :  { %v124_v58 = vmul.f32 %v167_v27, %v123_v56 }
 0x20e   :  { %128 = vperm.xlu0 %162, %v109_v57  }
 0x20f   :  { %131 = vperm.xlu1 %160, %v124_v58  }
 0x280   :  { %v129_v59 = vpop.permute.xlu0 %128 }
 0x281   :  { %v132_v60 = vpop.permute.xlu1 %131  ;;  %v133_v61 = vperm.slane %v129_v59, %v258_v10 }
 0x282   :  { %v134_v62 = vperm.slane %v132_v60, %v258_v10 }
 0x284   :  { %v135_v63 = vsel %vm57_vm1, %v134_v62, %v133_v61 }
 0x285   :  { %137 = vst.msk [vmem:[#allocation6] sm:$0x3] %vm60_vm2, %v135_v63 }
 0x286   :  { %148 = dma.vmem_to_hbm [thread:$0]  %s144_s2, 32, %s146_s24, [#allocation5]  }
 0x287   :  { %222 = dma.done.wait [#allocation5], 32  }
 0x288   :  { %223 = vsyncadd [#allocation5], 4294967264 }
 0x289   :  { %153 = vsyncpa [#allocation4], 1 }
 0x28a   :  { %154 = vsyncpa [#allocation5], 1 }

</bundles_post_ra>
